<compile_context>
chip_gen: v7x
topology: tpu7x:2x2x1
jax: 0.10.0
libtpu: 0.0.40
codegen_flags: <defaults>
</compile_context>

<pallas_src>
import math

import jax
import jax.numpy as jnp
from jax import lax
from jax.experimental import pallas as pl
from jax.experimental.pallas import tpu as pltpu


def _round_up(x, m):
    return ((x + m - 1) // m) * m


def _gelu(x):
    # Exact BERT gelu: x * 0.5 * (1 + erf(x / sqrt(2)))
    return x * 0.5 * (1.0 + lax.erf(x * (1.0 / math.sqrt(2.0))))


# ---------------------------------------------------------------------------
# LM prediction head: dense(H->H) -> gelu -> LayerNorm(H) -> decoder(H->V) + b
# Grid: (i = row tile of M=B*S, j = vocab tile of V). j innermost.
# ---------------------------------------------------------------------------
def lm_head_kernel(x_ref, dw_ref, db_ref, lnw_ref, lnb_ref,
                   decw_ref, decb_ref, out_ref, h_ref):
    j = pl.program_id(1)

    # Transform runs once per row tile (j == 0), result cached in VMEM scratch.
    @pl.when(j == 0)
    def _():
        # dense: x @ W.T + b  (bf16 x bf16 -> f32 acc, contraction on last dims)
        h = lax.dot_general(
            x_ref[...], dw_ref[...],
            dimension_numbers=(((1,), (1,)), ((), ())),
            preferred_element_type=jnp.float32) + db_ref[...]
        h = _gelu(h)
        # TF-style LayerNorm (eps inside sqrt, biased variance) in f32.
        u = jnp.mean(h, axis=-1, keepdims=True)
        s = jnp.mean((h - u) ** 2, axis=-1, keepdims=True)
        h = (h - u) * lax.rsqrt(s + 1e-12)
        h = lnw_ref[...] * h + lnb_ref[...]
        h_ref[...] = h.astype(h_ref.dtype)

    # decoder vocab tile: h @ Wdec.T + bias  (bf16 x bf16 -> f32 acc)
    scores = lax.dot_general(
        h_ref[...], decw_ref[...],
        dimension_numbers=(((1,), (1,)), ((), ())),
        preferred_element_type=jnp.float32) + decb_ref[...]
    out_ref[...] = scores.astype(out_ref.dtype)


# ---------------------------------------------------------------------------
# Next-sentence-prediction head: Linear(H, 2), output padded to 128 lanes.
# ---------------------------------------------------------------------------
def seq_rel_kernel(p_ref, w_ref, b_ref, out_ref):
    s = lax.dot_general(
        p_ref[...], w_ref[...],
        dimension_numbers=(((1,), (1,)), ((), ())),
        preferred_element_type=jnp.float32) + b_ref[...]
    out_ref[...] = s.astype(out_ref.dtype)


def bert_pretraining_heads(sequence_output, pooled_output, params,
                           *, tm=256, tv=1024, compute_dtype=jnp.bfloat16):
    """JAX wrapper reproducing BertPreTrainingHeads.forward."""
    B, S, H = sequence_output.shape
    V = params["decoder_w"].shape[0]
    M = B * S
    out_dtype = sequence_output.dtype

    # ---- tile sizes / padding (lane-dense, (8,128)-aligned) ----
    TM = min(tm, _round_up(M, 8))
    Mp = _round_up(M, TM)
    TV = min(tv, _round_up(V, 128))
    Vp = _round_up(V, TV)

    # ---- prepare operands (bf16 matmul inputs, f32 small params) ----
    x2d = sequence_output.reshape(M, H).astype(compute_dtype)
    if Mp != M:
        x2d = jnp.pad(x2d, ((0, Mp - M), (0, 0)))

    dense_w = params["dense_w"].astype(compute_dtype)                 # [H, H]  (out, in)
    dense_b = params["dense_b"].reshape(1, H).astype(jnp.float32)
    ln_w = params["ln_w"].reshape(1, H).astype(jnp.float32)
    ln_b = params["ln_b"].reshape(1, H).astype(jnp.float32)

    dec_w = params["decoder_w"].astype(compute_dtype)                 # [V, H]
    dec_b = params["decoder_b"].astype(jnp.float32)
    if Vp != V:
        dec_w = jnp.pad(dec_w, ((0, Vp - V), (0, 0)))
        dec_b = jnp.pad(dec_b, ((0, Vp - V),))
    dec_b = dec_b.reshape(1, Vp)

    grid = (Mp // TM, Vp // TV)

    pred_padded = pl.pallas_call(
        lm_head_kernel,
        out_shape=jax.ShapeDtypeStruct((Mp, Vp), out_dtype),
        grid_spec=pltpu.PrefetchScalarGridSpec(
            num_scalar_prefetch=0,
            grid=grid,
            in_specs=[
                pl.BlockSpec((TM, H), lambda i, j: (i, 0)),   # activations row tile
                pl.BlockSpec((H, H), lambda i, j: (0, 0)),    # dense W (resident)
                pl.BlockSpec((1, H), lambda i, j: (0, 0)),    # dense bias
                pl.BlockSpec((1, H), lambda i, j: (0, 0)),    # LN gamma
                pl.BlockSpec((1, H), lambda i, j: (0, 0)),    # LN beta
                pl.BlockSpec((TV, H), lambda i, j: (j, 0)),   # decoder W vocab tile
                pl.BlockSpec((1, TV), lambda i, j: (0, j)),   # decoder bias tile
            ],
            out_specs=pl.BlockSpec((TM, TV), lambda i, j: (i, j)),
            scratch_shapes=[pltpu.VMEM((TM, H), compute_dtype)],  # cached transform
        ),
        compiler_params=pltpu.CompilerParams(
            dimension_semantics=("parallel", "arbitrary"),
            vmem_limit_bytes=32 * 1024 * 1024,
        ),
    )(x2d, dense_w, dense_b, ln_w, ln_b, dec_w, dec_b)

    prediction_scores = pred_padded[:M, :V].reshape(B, S, V)

    # ---- NSP head: pad the 2-wide output up to one lane register (128) ----
    NP = 128
    w = params["seq_rel_w"]                                           # [2, H]
    b = params["seq_rel_b"]                                           # [2]
    w_p = jnp.pad(w, ((0, NP - w.shape[0]), (0, 0))).astype(jnp.float32)
    b_p = jnp.pad(b, ((0, NP - b.shape[0]),)).reshape(1, NP).astype(jnp.float32)

    rel_padded = pl.pallas_call(
        seq_rel_kernel,
        out_shape=jax.ShapeDtypeStruct((B, NP), jnp.float32),
        in_specs=[pl.BlockSpec(memory_space=pltpu.MemorySpace.VMEM)] * 3,
        out_specs=pl.BlockSpec(memory_space=pltpu.MemorySpace.VMEM),
    )(pooled_output.astype(jnp.float32), w_p, b_p)

    seq_relationship_score = rel_padded[:, :2].astype(pooled_output.dtype)
    return prediction_scores, seq_relationship_score


def init_params(key, hidden_size, vocab_size):
    """Deterministic synthetic parameter init (shapes match the PyTorch module)."""
    ks = jax.random.split(key, 4)
    scale = 1.0 / math.sqrt(hidden_size)
    return {
        # BertPredictionHeadTransform.dense : Linear(H, H)
        "dense_w": jax.random.normal(ks[0], (hidden_size, hidden_size), jnp.float32) * scale,
        "dense_b": jnp.zeros((hidden_size,), jnp.float32),
        # BertLayerNorm
        "ln_w": jnp.ones((hidden_size,), jnp.float32),
        "ln_b": jnp.zeros((hidden_size,), jnp.float32),
        # decoder: tied to bert_model_embedding_weights [V, H], no bias in Linear
        "decoder_w": jax.random.normal(ks[1], (vocab_size, hidden_size), jnp.float32) * scale,
        # separate LM bias, init to zeros
        "decoder_b": jnp.zeros((vocab_size,), jnp.float32),
        # seq_relationship: Linear(H, 2)
        "seq_rel_w": jax.random.normal(ks[2], (2, hidden_size), jnp.float32) * scale,
        "seq_rel_b": jnp.zeros((2,), jnp.float32),
    }


def _reference(sequence_output, pooled_output, p, compute_dtype=jnp.bfloat16):
    """Pure-JAX reference mirroring the kernel's bf16-matmul / f32-stats math.

    (The exact f32 PyTorch module output differs from this only by bf16
    rounding of the matmul operands, ~1e-2 relative.)
    """
    cd = compute_dtype
    h = jnp.einsum("bsh,oh->bso", sequence_output.astype(cd), p["dense_w"].astype(cd),
                   preferred_element_type=jnp.float32) + p["dense_b"]
    h = _gelu(h)
    u = jnp.mean(h, axis=-1, keepdims=True)
    s = jnp.mean((h - u) ** 2, axis=-1, keepdims=True)
    h = (h - u) * lax.rsqrt(s + 1e-12)
    h = p["ln_w"] * h + p["ln_b"]
    pred = jnp.einsum("bsh,vh->bsv", h.astype(cd), p["decoder_w"].astype(cd),
                      preferred_element_type=jnp.float32) + p["decoder_b"]
    rel = pooled_output @ p["seq_rel_w"].T + p["seq_rel_b"]
    return pred, rel


if __name__ == "__main__":
    B, S, H, V = 2, 8, 32, 64
    key = jax.random.PRNGKey(0)
    k_seq, k_pool, k_params = jax.random.split(key, 3)

    sequence_output = jax.random.normal(k_seq, (B, S, H), jnp.float32)
    pooled_output = jax.random.normal(k_pool, (B, H), jnp.float32)
    params = init_params(k_params, H, V)

    pred, rel = bert_pretraining_heads(sequence_output, pooled_output, params)
    jax.block_until_ready((pred, rel))

    pred_ref, rel_ref = _reference(sequence_output, pooled_output, params)
    assert pred.shape == (B, S, V) and rel.shape == (B, 2)
    assert jnp.allclose(pred, pred_ref, atol=2e-2, rtol=2e-2)
    assert jnp.allclose(rel, rel_ref, atol=1e-4, rtol=1e-4)

    print("KERNEL_OK")
</pallas_src>

<mosaic_0001>
module attributes {stable_mosaic.version = 11 : i64} {
  func.func @lm_head_kernel(%arg0: i32, %arg1: i32, %arg2: memref<16x32xbf16, #tpu.memory_space<vmem>>, %arg3: memref<32x32xbf16, #tpu.memory_space<vmem>>, %arg4: memref<1x32xf32, #tpu.memory_space<vmem>>, %arg5: memref<1x32xf32, #tpu.memory_space<vmem>>, %arg6: memref<1x32xf32, #tpu.memory_space<vmem>>, %arg7: memref<128x32xbf16, #tpu.memory_space<vmem>>, %arg8: memref<1x128xf32, #tpu.memory_space<vmem>>, %arg9: memref<16x128xf32, #tpu.memory_space<vmem>>, %arg10: memref<16x32xbf16, #tpu.memory_space<vmem>>) attributes {dimension_semantics = [#tpu.dimension_semantics<parallel>, #tpu.dimension_semantics<arbitrary>], iteration_bounds = array<i64: 1, 1>, scalar_prefetch = 0 : i64, scratch_operands = 1 : i64, tpu.core_type = #tpu.core_type<tc>, window_params = [{transform_indices = @transform_0, window_bounds = array<i64: 16, 32>}, {pipeline_mode = #tpu.pipeline_mode<synchronous>, transform_indices = @transform_1, window_bounds = array<i64: 32, 32>}, {pipeline_mode = #tpu.pipeline_mode<synchronous>, transform_indices = @transform_2, window_bounds = array<i64: 1, 32>}, {pipeline_mode = #tpu.pipeline_mode<synchronous>, transform_indices = @transform_3, window_bounds = array<i64: 1, 32>}, {pipeline_mode = #tpu.pipeline_mode<synchronous>, transform_indices = @transform_4, window_bounds = array<i64: 1, 32>}, {transform_indices = @transform_5, window_bounds = array<i64: 128, 32>}, {transform_indices = @transform_6, window_bounds = array<i64: 1, 128>}, {transform_indices = @transform_7, window_bounds = array<i64: 16, 128>}]} {
    %c0_i32 = arith.constant 0 : i32
    %0 = arith.cmpi eq, %arg1, %c0_i32 : i32
    %1 = arith.extui %0 : i1 to i32
    %c0_i32_0 = arith.constant 0 : i32
    %2 = arith.cmpi ne, %1, %c0_i32_0 : i32
    scf.if %2 {
      %c0_8 = arith.constant 0 : index
      %c0_9 = arith.constant 0 : index
      %10 = vector.load %arg2[%c0_8, %c0_9] : memref<16x32xbf16, #tpu.memory_space<vmem>>, vector<16x32xbf16>
      %c0_10 = arith.constant 0 : index
      %c0_11 = arith.constant 0 : index
      %11 = vector.load %arg3[%c0_10, %c0_11] : memref<32x32xbf16, #tpu.memory_space<vmem>>, vector<32x32xbf16>
      %cst_12 = arith.constant dense<0.000000e+00> : vector<16x32xf32>
      %12 = tpu.matmul %10, %11, %cst_12 {dimension_numbers = #tpu.dot_dimension_numbers<[1], [1], [0], [0], [0, 0, 1, 0], [], []>} : vector<16x32xbf16>, vector<32x32xbf16>, vector<16x32xf32> -> vector<16x32xf32>
      %c0_13 = arith.constant 0 : index
      %c0_14 = arith.constant 0 : index
      %13 = vector.load %arg4[%c0_13, %c0_14] : memref<1x32xf32, #tpu.memory_space<vmem>>, vector<1x32xf32>
      %14 = vector.broadcast %13 : vector<1x32xf32> to vector<16x32xf32>
      %15 = arith.addf %12, %14 : vector<16x32xf32>
      %cst_15 = arith.constant 5.000000e-01 : f32
      %16 = vector.broadcast %cst_15 : f32 to vector<16x32xf32>
      %17 = arith.mulf %15, %16 : vector<16x32xf32>
      %cst_16 = arith.constant 0.707106769 : f32
      %18 = vector.broadcast %cst_16 : f32 to vector<16x32xf32>
      %19 = arith.mulf %15, %18 : vector<16x32xf32>
      %20 = math.erf %19 : vector<16x32xf32>
      %cst_17 = arith.constant 1.000000e+00 : f32
      %21 = vector.broadcast %cst_17 : f32 to vector<16x32xf32>
      %22 = arith.addf %21, %20 : vector<16x32xf32>
      %23 = arith.mulf %17, %22 : vector<16x32xf32>
      %cst_18 = arith.constant dense<0.000000e+00> : vector<16xf32>
      %24 = vector.multi_reduction <add>, %23, %cst_18 [1] : vector<16x32xf32> to vector<16xf32>
      %25 = vector.shape_cast %24 : vector<16xf32> to vector<16x1xf32>
      %cst_19 = arith.constant 3.200000e+01 : f32
      %26 = vector.broadcast %cst_19 : f32 to vector<16x1xf32>
      %27 = arith.divf %25, %26 : vector<16x1xf32>
      %28 = vector.broadcast %27 : vector<16x1xf32> to vector<16x32xf32>
      %29 = arith.subf %23, %28 : vector<16x32xf32>
      %30 = arith.mulf %29, %29 : vector<16x32xf32>
      %cst_20 = arith.constant dense<0.000000e+00> : vector<16xf32>
      %31 = vector.multi_reduction <add>, %30, %cst_20 [1] : vector<16x32xf32> to vector<16xf32>
      %32 = vector.shape_cast %31 : vector<16xf32> to vector<16x1xf32>
      %cst_21 = arith.constant 3.200000e+01 : f32
      %33 = vector.broadcast %cst_21 : f32 to vector<16x1xf32>
      %34 = arith.divf %32, %33 : vector<16x1xf32>
      %35 = vector.broadcast %27 : vector<16x1xf32> to vector<16x32xf32>
      %36 = arith.subf %23, %35 : vector<16x32xf32>
      %cst_22 = arith.constant 9.99999996E-13 : f32
      %37 = vector.broadcast %cst_22 : f32 to vector<16x1xf32>
      %38 = arith.addf %34, %37 : vector<16x1xf32>
      %39 = math.rsqrt %38 : vector<16x1xf32>
      %40 = vector.broadcast %39 : vector<16x1xf32> to vector<16x32xf32>
      %41 = arith.mulf %36, %40 : vector<16x32xf32>
      %c0_23 = arith.constant 0 : index
      %c0_24 = arith.constant 0 : index
      %42 = vector.load %arg5[%c0_23, %c0_24] : memref<1x32xf32, #tpu.memory_space<vmem>>, vector<1x32xf32>
      %43 = vector.broadcast %42 : vector<1x32xf32> to vector<16x32xf32>
      %44 = arith.mulf %43, %41 : vector<16x32xf32>
      %c0_25 = arith.constant 0 : index
      %c0_26 = arith.constant 0 : index
      %45 = vector.load %arg6[%c0_25, %c0_26] : memref<1x32xf32, #tpu.memory_space<vmem>>, vector<1x32xf32>
      %46 = vector.broadcast %45 : vector<1x32xf32> to vector<16x32xf32>
      %47 = arith.addf %44, %46 : vector<16x32xf32>
      %48 = arith.truncf %47 : vector<16x32xf32> to vector<16x32xbf16>
      %c0_27 = arith.constant 0 : index
      %c0_28 = arith.constant 0 : index
      %49 = vector.load %arg10[%c0_27, %c0_28] : memref<16x32xbf16, #tpu.memory_space<vmem>>, vector<16x32xbf16>
      tpu.vector_store %arg10[%c0_27, %c0_28], %48 {strides = array<i32>} : memref<16x32xbf16, #tpu.memory_space<vmem>>, vector<16x32xbf16>,
    } else {
    }
    %c0 = arith.constant 0 : index
    %c0_1 = arith.constant 0 : index
    %3 = vector.load %arg10[%c0, %c0_1] : memref<16x32xbf16, #tpu.memory_space<vmem>>, vector<16x32xbf16>
    %c0_2 = arith.constant 0 : index
    %c0_3 = arith.constant 0 : index
    %4 = vector.load %arg7[%c0_2, %c0_3] : memref<128x32xbf16, #tpu.memory_space<vmem>>, vector<128x32xbf16>
    %cst = arith.constant dense<0.000000e+00> : vector<16x128xf32>
    %5 = tpu.matmul %3, %4, %cst {dimension_numbers = #tpu.dot_dimension_numbers<[1], [1], [0], [0], [0, 0, 1, 0], [], []>} : vector<16x32xbf16>, vector<128x32xbf16>, vector<16x128xf32> -> vector<16x128xf32>
    %c0_4 = arith.constant 0 : index
    %c0_5 = arith.constant 0 : index
    %6 = vector.load %arg8[%c0_4, %c0_5] : memref<1x128xf32, #tpu.memory_space<vmem>>, vector<1x128xf32>
    %7 = vector.broadcast %6 : vector<1x128xf32> to vector<16x128xf32>
    %8 = arith.addf %5, %7 : vector<16x128xf32>
    %c0_6 = arith.constant 0 : index
    %c0_7 = arith.constant 0 : index
    %9 = vector.load %arg9[%c0_6, %c0_7] : memref<16x128xf32, #tpu.memory_space<vmem>>, vector<16x128xf32>
    tpu.vector_store %arg9[%c0_6, %c0_7], %8 {strides = array<i32>} : memref<16x128xf32, #tpu.memory_space<vmem>>, vector<16x128xf32>,
    return
  }
  func.func @transform_0(%arg0: i32, %arg1: i32) -> (i32, i32) {
    %c0_i32 = arith.constant 0 : i32
    %c0_i32_0 = arith.constant 0 : i32
    return %arg0, %c0_i32 : i32, i32
  }
  func.func @transform_1(%arg0: i32, %arg1: i32) -> (i32, i32) {
    %c0_i32 = arith.constant 0 : i32
    %c0_i32_0 = arith.constant 0 : i32
    %c0_i32_1 = arith.constant 0 : i32
    return %c0_i32, %c0_i32_0 : i32, i32
  }
  func.func @transform_2(%arg0: i32, %arg1: i32) -> (i32, i32) {
    %c0_i32 = arith.constant 0 : i32
    %c0_i32_0 = arith.constant 0 : i32
    %c0_i32_1 = arith.constant 0 : i32
    return %c0_i32, %c0_i32_0 : i32, i32
  }
  func.func @transform_3(%arg0: i32, %arg1: i32) -> (i32, i32) {
    %c0_i32 = arith.constant 0 : i32
    %c0_i32_0 = arith.constant 0 : i32
    %c0_i32_1 = arith.constant 0 : i32
    return %c0_i32, %c0_i32_0 : i32, i32
  }
  func.func @transform_4(%arg0: i32, %arg1: i32) -> (i32, i32) {
    %c0_i32 = arith.constant 0 : i32
    %c0_i32_0 = arith.constant 0 : i32
    %c0_i32_1 = arith.constant 0 : i32
    return %c0_i32, %c0_i32_0 : i32, i32
  }
  func.func @transform_5(%arg0: i32, %arg1: i32) -> (i32, i32) {
    %c0_i32 = arith.constant 0 : i32
    %c0_i32_0 = arith.constant 0 : i32
    return %arg1, %c0_i32 : i32, i32
  }
  func.func @transform_6(%arg0: i32, %arg1: i32) -> (i32, i32) {
    %c0_i32 = arith.constant 0 : i32
    %c0_i32_0 = arith.constant 0 : i32
    return %c0_i32, %arg1 : i32, i32
  }
  func.func @transform_7(%arg0: i32, %arg1: i32) -> (i32, i32) {
    %c0_i32 = arith.constant 0 : i32
    return %arg0, %arg1 : i32, i32
  }
}

</mosaic_0001>

<bundles_post_ra>
// kernel: tpu_custom_call.1
= control target key start
LH: loop header
LB: loop body
LE: loop exit
PB: predicated region body
PF: predicated region fallthrough
CT: control target
= control target key end

     0   :  { %v424_v1 = vmov 0.0   ;;  %vm60_vm0 = vcmask 261120   ;;  %vm425_vm1 = vmmov 0   ;;  %s555_s0 = inlined_call_operand.vmem [shape: bf16[16,32], index: 0, kind: input, shape index: {}]   ;;  %s556_s1 = inlined_call_operand.vmem [shape: bf16[32,32], index: 1, kind: input, shape index: {}]   ;;  %s557_s2 = inlined_call_operand.vmem [shape: f32[1,32], index: 2, kind: input, shape index: {}]   ;;  %s558_s3 = inlined_call_operand.vmem [shape: f32[1,32], index: 3, kind: input, shape index: {}]   ;;  %s559_s4 = inlined_call_operand.vmem [shape: f32[1,32], index: 4, kind: input, shape index: {}]   ;;  %s560_s5 = inlined_call_operand.vmem [shape: bf16[128,32], index: 5, kind: input, shape index: {}]   ;;  %s561_s6 = inlined_call_operand.vmem [shape: f32[1,128], index: 6, kind: input, shape index: {}]   ;;  %s562_s7 = inlined_call_operand.hbm [shape: f32[16,128], index: 7, kind: output, shape index: {}]  }
   0x1   :  { %v381_v0 = vld [vmem:[%s556_s1] sm:$0xff]   ;;  %348 = vmatprep.subr.bf16.mxu0 %v424_v1  ;;  %v382_v2 = vld [vmem:[%s556_s1 + $0x8] sm:$0xff]   ;;  %356 = vmatprep.subr.bf16.mxu1 %v424_v1 }
   0x2   :  { %v65_v3 = vsel %vm60_vm0, %v381_v0, 0  ;;  %v68_v4 = vsel %vm60_vm0, %v382_v2, 0  ;;  %352 = vmatprep.mubr.msk.bf16.mxu0 %vm425_vm1, %v424_v1  ;;  %372 = vmatprep.mubr.msk.bf16.mxu1 %vm425_vm1, %v424_v1 }
   0x3   :  { %349 = vmatpush3.bf16.xpose.msra.mxu0 %v65_v3 }
   0x4   :  { %350 = vmatprep.subr.bf16.mxu0 %v424_v1 }
   0x5   :  { %12 = vsyncpa [#allocation4], 0  ;;  %v383_v5 = vld [vmem:[%s555_s0] sm:$0xff]   ;;  %v385_v27 = vld [vmem:[%s560_s5 + $0x8] sm:$0xff]  }
   0x6   :  { %v319_v6 = vld [vmem:[%s557_s2] ss:$0 sm:$0xff]  ;;  %v240_v28 = vsel %vm60_vm0, %v385_v27, 0  ;;  %v386_v29 = vld [vmem:[%s560_s5 + $0x10] sm:$0xff]   ;;  %v387_v31 = vld [vmem:[%s560_s5 + $0x18] sm:$0xff]  }
   0x7   :  { %v384_v25 = vld [vmem:[%s560_s5] sm:$0xff]   ;;  %v243_v30 = vsel %vm60_vm0, %v386_v29, 0  ;;  %v246_v32 = vsel %vm60_vm0, %v387_v31, 0  ;;  %v389_v45 = vld [vmem:[%s560_s5 + $0x28] sm:$0xff]   ;;  %v390_v47 = vld [vmem:[%s560_s5 + $0x30] sm:$0xff]  }
   0x8   :  { %v237_v26 = vsel %vm60_vm0, %v384_v25, 0  ;;  %v388_v43 = vld [vmem:[%s560_s5 + $0x20] sm:$0xff]   ;;  %v252_v46 = vsel %vm60_vm0, %v389_v45, 0  ;;  %v255_v48 = vsel %vm60_vm0, %v390_v47, 0  ;;  %v391_v49 = vld [vmem:[%s560_s5 + $0x38] sm:$0xff]  }
   0x9   :  { %357 = vmatpush3.bf16.xpose.msra.mxu1 %v237_v26  ;;  %v249_v44 = vsel %vm60_vm0, %v388_v43, 0  ;;  %v258_v50 = vsel %vm60_vm0, %v391_v49, 0  ;;  %v324_v59 = vld [vmem:[%s558_s3] ss:$0 sm:$0xff]  ;;  %s426_s3 = smov [#allocation3]  }
   0xa   :  { %358 = vmatprep.subr.bf16.mxu1 %v424_v1  ;;  %v325_v63 = vld [vmem:[%s559_s4] ss:$0 sm:$0xff]  ;;  %s308_s27 = sshll.u32 %s426_s3, 4  ;;  %s309_s27 = int_to_ptr.vmem [resolvable:$true] %s308_s27 }
   0xb   :  { %351 = vmatpush3.bf16.xpose.msra.mxu0 %v68_v4  ;;  %s400_s4 = scalar_lea.vmem %s309_s27, 256  ;;  %p405_p1 = scmp.lt.s32.totalorder %s309_s27, %s309_s27 }
   0xc   :  { %p401_p0 = scmp.ne.s32.totalorder %s309_s27, %s400_s4  ;;  %p406_p2 = scmp.lt.s32.totalorder %s400_s4, %s400_s4 }
   0xe   :  { %p407_p3 = por %p406_p2, %p405_p1 }
  0x10   :  { %p408_p4 = pnand %p407_p3, %p401_p0 }
  0x11   :  { %359 = vmatpush3.bf16.xpose.msra.mxu1 %v240_v28 }
  0x12   :  { %353 = vmatmul.mubr.msk.bf16.vlgmr.msra.gmra.mrb[0].mxu0 %vm60_vm0, %v383_v5  ;;  %360 = vmatprep.subr.bf16.mxu1 %v424_v1  ;;  %v326_v5 = vld [vmem:[%s561_s6] ss:$0 sm:$0xff] }
  0x19   :  { %361 = vmatpush3.bf16.xpose.msra.mxu1 %v243_v30 }
  0x1a   :  { %362 = vmatprep.subr.bf16.mxu1 %v424_v1 }
  0x21   :  { %363 = vmatpush3.bf16.xpose.msra.mxu1 %v246_v32 }
  0x22   :  { %364 = vmatprep.subr.bf16.mxu1 %v424_v1 }
  0x29   :  { %365 = vmatpush3.bf16.xpose.msra.mxu1 %v249_v44 }
  0x2a   :  { %366 = vmatprep.subr.bf16.mxu1 %v424_v1 }
  0x31   :  { %367 = vmatpush3.bf16.xpose.msra.mxu1 %v252_v46 }
  0x32   :  { %368 = vmatprep.subr.bf16.mxu1 %v424_v1 }
  0x39   :  { %369 = vmatpush3.bf16.xpose.msra.mxu1 %v255_v48 }
  0x3a   :  { %370 = vmatprep.subr.bf16.mxu1 %v424_v1 }
  0x41   :  { %371 = vmatpush3.bf16.xpose.msra.mxu1 %v258_v50 }
  0xe5   :  { %v104_v7 = vpop.f32.mrb[0].mxu0 }
  0xe6   :  { %v105_v8 = vadd.f32 %v319_v6, %v104_v7  ;;  %v354_v9 = vpop.f32.mrb[1].mxu0 }
  0xe7   :  { %v107_v10 = vpop.f32.mrb[2].mxu0 }
  0xe8   :  { %v113_v11 = vmul.f32 0.70710677, %v105_v8  ;;  %v108_v12 = vadd.f32 %v319_v6, %v107_v10  ;;  %v355_v13 = vpop.f32.mrb[3].mxu0  ;;  %v111_v16 = vmul.f32 0.5, %v105_v8 }
  0xea   :  { %392 = verf.f32 %v113_v11  ;;  %v114_v14 = vmul.f32 0.70710677, %v108_v12  ;;  %v112_v19 = vmul.f32 0.5, %v108_v12 }
  0xec   :  { %394 = verf.f32 %v114_v14 }
  0xf4   :  { %v393_v15 = vpop.eup %392 }
  0xf5   :  { %v117_v17 = vadd.f32 1.0, %v393_v15 }
  0xf6   :  { %v395_v18 = vpop.eup %394 }
  0xf7   :  { %v119_v20 = vmul.f32 %v117_v17, %v111_v16  ;;  %v118_v21 = vadd.f32 1.0, %v395_v18 }
  0xf9   :  { %v121_v22 = vsel %vm60_vm0, %v119_v20, 0.0  ;;  %v120_v23 = vmul.f32 %v118_v21, %v112_v19 }
  0xfa   :  { %122 = vadd.xlane.f32.xlu0 %v121_v22 }
  0xfb   :  { %v124_v24 = vsel %vm60_vm0, %v120_v23, 0.0 }
  0xfe   :  { %125 = vadd.xlane.f32.xlu0 %v124_v24 }
 0x187   :  { %v123_v33 = vpop.xlane.xlu0 %122 }
 0x188   :  { %v128_v34 = vmul.f32 0.03125, %v123_v33 }
 0x18a   :  { %v130_v35 = vsub.f32 %v119_v20, %v128_v34 }
 0x18b   :  { %v126_v36 = vpop.xlane.xlu0 %125 }
 0x18c   :  { %v129_v37 = vmul.f32 0.03125, %v126_v36  ;;  %v132_v38 = vmul.f32 %v130_v35, %v130_v35 }
 0x18e   :  { %v131_v39 = vsub.f32 %v120_v23, %v129_v37  ;;  %v134_v40 = vsel %vm60_vm0, %v132_v38, 0.0 }
 0x18f   :  { %135 = vadd.xlane.f32.xlu1 %v134_v40 }
 0x190   :  { %v133_v41 = vmul.f32 %v131_v39, %v131_v39 }
 0x192   :  { %v137_v42 = vsel %vm60_vm0, %v133_v41, 0.0 }
 0x193   :  { %138 = vadd.xlane.f32.xlu1 %v137_v42 }
 0x21c   :  { %v136_v51 = vpop.xlane.xlu1 %135 }
 0x21d   :  { %v140_v52 = vmul.f32 0.03125, %v136_v51 }
 0x21f   :  { %v142_v53 = vadd.f32 1e-12, %v140_v52 }
 0x220   :  { %v139_v54 = vpop.xlane.xlu1 %138 }
 0x221   :  { %396 = vrsqrt.f32 %v142_v53  ;;  %v141_v55 = vmul.f32 0.03125, %v139_v54 }
 0x223   :  { %v143_v56 = vadd.f32 1e-12, %v141_v55 }
 0x225   :  { %398 = vrsqrt.f32 %v143_v56 }
 0x22b   :  { %v397_v57 = vpop.eup %396 }
 0x22c   :  { %v146_v58 = vmul.f32 %v397_v57, %v130_v35 }
 0x22e   :  { %v155_v61 = vmul.f32 %v324_v59, %v146_v58 }
 0x22f   :  { %v399_v60 = vpop.eup %398 }
 0x230   :  { %v147_v62 = vmul.f32 %v399_v60, %v131_v39  ;;  %v164_v1 = vadd.f32 %v325_v63, %v155_v61 }
 0x232   :  { %v156_v0 = vmul.f32 %v324_v59, %v147_v62 }
 0x234   :  { %v165_v2 = vadd.f32 %v325_v63, %v156_v0 }
 0x236   :  { %v166_v3 = vpack.c.bf16 %v165_v2, %v164_v1 }
 0x238   :  { %167 = vst.msk [vmem:[#allocation2] sm:$0xff] %vm60_vm0, %v166_v3 }
 0x23f   :  { %v168_v4 = vld [vmem:[#allocation2] sm:$0xff] }
 0x240   :  { %373 = vmatmul.mubr.msk.bf16.vlgmr.msra.gmra.mrb[0].mxu1 %vm60_vm0, %v168_v4 }
 0x313   :  { %v294_v6 = vpop.f32.mrb[0].mxu1 }
 0x314   :  { %v295_v7 = vadd.f32 %v326_v5, %v294_v6  ;;  %v374_v8 = vpop.f32.mrb[1].mxu1 }
 0x315   :  { %v297_v9 = vpop.f32.mrb[2].mxu1 }
 0x316   :  { %301 = vst [vmem:[#allocation3] sm:$0xff] %v295_v7  ;;  %v298_v10 = vadd.f32 %v326_v5, %v297_v9  ;;  %v375_v11 = vpop.f32.mrb[3].mxu1 }
 0x318   :  { %302 = vst [vmem:[#allocation3 + $0x8] sm:$0xff] %v298_v10 }
 0x319   :  { %411 = shalt.err (!%p408_p4)
}
 0x31a   :  { %s412_s29 = scalar_lea.hbm %s562_s7, 256 }
 0x31b   :  { %p413_p5 = scmp.ne.s32.totalorder %s562_s7, %s412_s29  ;;  %p416_p6 = scmp.lt.u32.totalorder %s412_s29, %s562_s7 }
 0x31d   :  { %p418_p7 = pnand %p416_p6, %p413_p5 }
 0x31f   :  { %421 = shalt.err (!%p418_p7)
}
 0x320   :  { %s427_s8 = smov 128   ;;  %s428_s9 = smov 8  }
 0x321   :  { %314 = dma.vmem_to_hbm [thread:$0]  %s309_s27, 256, %s562_s7, [#allocation4], %s427_s8, %s427_s8, %s428_s9  }
 0x322   :  { %422 = dma.done.wait [#allocation4], 256  }
 0x323   :  { %423 = vsyncadd [#allocation4], 4294967040 }
 0x324   :  { %318 = vsyncpa [#allocation4], 1 }

</bundles_post_ra>
